<compile_context>
chip_gen: v6e
topology: v6e:2x2x1
jax: 0.10.0
libtpu: 0.0.40
codegen_flags: <defaults>
</compile_context>

<pallas_src>
import math

import jax
import jax.numpy as jnp
from jax import lax
from jax.experimental import pallas as pl
from jax.experimental.pallas import tpu as pltpu


def _disc_kernel(x_ref, w1_ref, w2_ref, aux_ref, out_ref):
    # x_ref:   (TB, num_inputs)  natural layout; batch on sublanes coming in
    # w1_ref:  (H, num_inputs)   mxu_dtype
    # w2_ref:  (H, H)            mxu_dtype
    # aux_ref: (H, 4) f32        columns: [b1, b2, w3, b3(broadcast)]
    # out_ref: (1, TB)           lane-dense output slab (batch on lanes)
    aux = aux_ref[...]
    b1 = aux[:, 0:1]                       # (H, 1)
    b2 = aux[:, 1:2]                       # (H, 1)
    w3 = aux[:, 2:3]                       # (H, 1)
    b3 = aux[0:1, 3:4]                     # (1, 1)

    # In-kernel cast only (x stays f32 in HBM; no extra wrapper HBM pass).
    x = x_ref[...].astype(w1_ref.dtype)    # (TB, num_inputs)

    # fc1: contract feature dims of w1 (H, K) and x (TB, K) -> (H, TB).
    # This keeps the batch on lanes without any HBM-level transpose of x.
    h1 = jnp.tanh(
        lax.dot_general(
            w1_ref[...], x,
            dimension_numbers=(((1,), (1,)), ((), ())),
            preferred_element_type=jnp.float32,
        ) + b1
    )                                       # (H, TB) f32

    # fc2: standard (H, H) @ (H, TB) -> (H, TB).
    h2 = jnp.tanh(
        jnp.dot(w2_ref[...], h1.astype(w2_ref.dtype),
                preferred_element_type=jnp.float32) + b2
    )                                       # (H, TB) f32

    # fc3 (single output unit): VPU multiply + cross-sublane reduce.
    logit = jnp.sum(h2 * w3, axis=0, keepdims=True) + b3          # (1, TB)

    # sigmoid(z) = 1 / (1 + exp(-z)) with approx reciprocal on the EUP.
    prob = pl.reciprocal(1.0 + jnp.exp(-logit), approx=True)
    out_ref[...] = prob.astype(out_ref.dtype)


def discriminator_forward(x, params, *, block_b=4096, mxu_dtype=jnp.bfloat16,
                          core_parallel=False):
    """x: (B, num_inputs) f32 in natural layout (no wrapper relayout).
    params in native PyTorch layout:
      w1 (H, in), b1 (H,), w2 (H, H), b2 (H,), w3 (1, H), b3 (1,).

    Note: with mxu_dtype=bfloat16 the x tile itself is quantized to bf16 inside
    the kernel (f32 accumulation), so expect ~1e-2 level numeric deltas."""
    w1, b1 = params["w1"], params["b1"]
    w2, b2 = params["w2"], params["b2"]
    w3, b3 = params["w3"], params["b3"]

    B, num_inputs = x.shape
    H = w1.shape[0]

    # Batch tile: defensively round block_b down to a multiple of 128 (lane
    # width), collapse small batches to a single grid step.
    block_b = max(128, (block_b // 128) * 128)
    TB = min(block_b, pl.cdiv(B, 128) * 128)
    grid = (pl.cdiv(B, TB),)

    # Weights: tiny one-time casts (x is NOT touched in the wrapper).
    w1c = w1.astype(mxu_dtype)
    w2c = w2.astype(mxu_dtype)
    # Pack b1 / b2 / fc3 weight / fc3 bias into one resident (H, 4) array.
    aux = jnp.concatenate(
        [
            b1.reshape(H, 1),
            b2.reshape(H, 1),
            w3.reshape(H, 1),                         # (1, H) -> column = w3.T
            jnp.broadcast_to(b3.reshape(1, 1), (H, 1)),
        ],
        axis=1,
    ).astype(jnp.float32)                             # (H, 4)

    const = lambda i: (0, 0)                          # VMEM-resident across steps
    batch_sem = pltpu.CORE_PARALLEL if core_parallel else pltpu.PARALLEL

    out = pl.pallas_call(
        _disc_kernel,
        out_shape=jax.ShapeDtypeStruct((1, B), jnp.float32),
        grid=grid,
        in_specs=[
            pl.BlockSpec((TB, num_inputs), lambda i: (i, 0)),  # x tile, pipelined
            pl.BlockSpec((H, num_inputs), const),              # w1
            pl.BlockSpec((H, H), const),                       # w2
            pl.BlockSpec((H, 4), const),                       # packed biases/fc3
        ],
        out_specs=pl.BlockSpec((1, TB), lambda i: (0, i)),
        compiler_params=pltpu.CompilerParams(
            dimension_semantics=(batch_sem,),
        ),
    )(x, w1c, w2c, aux)

    return out.reshape(B, 1)


def init_params(key, num_inputs, hidden_size):
    """Deterministic init mirroring torch.nn.Linear defaults
    (uniform(-1/sqrt(fan_in), 1/sqrt(fan_in))), then fc3.weight *= 0.1,
    fc3.bias *= 0.  Weights stored in PyTorch (out_features, in_features) layout."""
    ks = jax.random.split(key, 6)

    def linear(kw, kb, fan_in, fan_out):
        bound = 1.0 / math.sqrt(fan_in)
        w = jax.random.uniform(kw, (fan_out, fan_in), jnp.float32, -bound, bound)
        b = jax.random.uniform(kb, (fan_out,), jnp.float32, -bound, bound)
        return w, b

    w1, b1 = linear(ks[0], ks[1], num_inputs, hidden_size)
    w2, b2 = linear(ks[2], ks[3], hidden_size, hidden_size)
    w3, b3 = linear(ks[4], ks[5], hidden_size, 1)
    w3 = w3 * 0.1   # fc3.weight.data.mul_(0.1)
    b3 = b3 * 0.0   # fc3.bias.data.mul_(0.0)
    return dict(w1=w1, b1=b1, w2=w2, b2=b2, w3=w3, b3=b3)


def _reference(x, p):
    h1 = jnp.tanh(x @ p["w1"].T + p["b1"])
    h2 = jnp.tanh(h1 @ p["w2"].T + p["b2"])
    return jax.nn.sigmoid(h2 @ p["w3"].T + p["b3"])


if __name__ == "__main__":
    key = jax.random.PRNGKey(0)
    k_x, k_x2, k_p = jax.random.split(key, 3)

    num_inputs = 16
    hidden_size = 32
    params = init_params(k_p, num_inputs, hidden_size)

    # Small batch (single, ragged grid step) -- matches the toy PyTorch usage.
    x_small = jax.random.normal(k_x, (8, num_inputs), dtype=jnp.float32)
    ref_small = _reference(x_small, params)

    prob_bf16 = discriminator_forward(x_small, params)          # default bf16 MXU
    jax.block_until_ready(prob_bf16)
    assert prob_bf16.shape == (8, 1)
    assert jnp.allclose(prob_bf16, ref_small, atol=3e-2, rtol=3e-2)

    prob_f32 = discriminator_forward(x_small, params, mxu_dtype=jnp.float32)
    jax.block_until_ready(prob_f32)
    assert prob_f32.shape == (8, 1)
    # approx-reciprocal sigmoid -> relaxed (but still tight) tolerance
    assert jnp.allclose(prob_f32, ref_small, atol=5e-3, rtol=5e-3)

    # Larger, non-aligned batch with a small tile: exercises multi-step
    # pipelined grid + ragged last block (600 = 2*256 + 88), no wrapper pad.
    x_big = jax.random.normal(k_x2, (600, num_inputs), dtype=jnp.float32)
    ref_big = _reference(x_big, params)

    prob_big = discriminator_forward(x_big, params, block_b=256,
                                     mxu_dtype=jnp.float32)
    jax.block_until_ready(prob_big)
    assert prob_big.shape == (600, 1)
    assert jnp.allclose(prob_big, ref_big, atol=5e-3, rtol=5e-3)

    prob_big_bf16 = discriminator_forward(x_big, params)        # default TB, bf16
    jax.block_until_ready(prob_big_bf16)
    assert prob_big_bf16.shape == (600, 1)
    assert jnp.allclose(prob_big_bf16, ref_big, atol=3e-2, rtol=3e-2)

    print("KERNEL_OK")
</pallas_src>

<mosaic_0001>
module attributes {stable_mosaic.version = 11 : i64} {
  func.func @_disc_kernel(%arg0: i32, %arg1: memref<128x16xf32, #tpu.memory_space<vmem>>, %arg2: memref<32x16xbf16, #tpu.memory_space<vmem>>, %arg3: memref<32x32xbf16, #tpu.memory_space<vmem>>, %arg4: memref<32x4xf32, #tpu.memory_space<vmem>>, %arg5: memref<1x128xf32, #tpu.memory_space<vmem>>) attributes {dimension_semantics = [#tpu.dimension_semantics<parallel>], iteration_bounds = array<i64: 1>, scalar_prefetch = 0 : i64, scratch_operands = 0 : i64, tpu.core_type = #tpu.core_type<tc>, window_params = [{transform_indices = @transform_0, window_bounds = array<i64: 128, 16>}, {pipeline_mode = #tpu.pipeline_mode<synchronous>, transform_indices = @transform_1, window_bounds = array<i64: 32, 16>}, {pipeline_mode = #tpu.pipeline_mode<synchronous>, transform_indices = @transform_2, window_bounds = array<i64: 32, 32>}, {pipeline_mode = #tpu.pipeline_mode<synchronous>, transform_indices = @transform_3, window_bounds = array<i64: 32, 4>}, {transform_indices = @transform_4, window_bounds = array<i64: 1, 128>}]} {
    %c0 = arith.constant 0 : index
    %c0_0 = arith.constant 0 : index
    %0 = vector.load %arg4[%c0, %c0_0] : memref<32x4xf32, #tpu.memory_space<vmem>>, vector<32x4xf32>
    %1 = vector.extract_strided_slice %0 {offsets = [0, 0], sizes = [32, 1], strides = [1, 1]} : vector<32x4xf32> to vector<32x1xf32>
    %2 = vector.extract_strided_slice %0 {offsets = [0, 1], sizes = [32, 1], strides = [1, 1]} : vector<32x4xf32> to vector<32x1xf32>
    %3 = vector.extract_strided_slice %0 {offsets = [0, 2], sizes = [32, 1], strides = [1, 1]} : vector<32x4xf32> to vector<32x1xf32>
    %4 = vector.extract_strided_slice %0 {offsets = [0, 3], sizes = [1, 1], strides = [1, 1]} : vector<32x4xf32> to vector<1x1xf32>
    %c0_1 = arith.constant 0 : index
    %c0_2 = arith.constant 0 : index
    %5 = vector.load %arg1[%c0_1, %c0_2] : memref<128x16xf32, #tpu.memory_space<vmem>>, vector<128x16xf32>
    %6 = arith.truncf %5 : vector<128x16xf32> to vector<128x16xbf16>
    %c0_3 = arith.constant 0 : index
    %c0_4 = arith.constant 0 : index
    %7 = vector.load %arg2[%c0_3, %c0_4] : memref<32x16xbf16, #tpu.memory_space<vmem>>, vector<32x16xbf16>
    %cst = arith.constant dense<0.000000e+00> : vector<32x128xf32>
    %8 = tpu.matmul %7, %6, %cst {dimension_numbers = #tpu.dot_dimension_numbers<[1], [1], [0], [0], [0, 0, 1, 0], [], []>} : vector<32x16xbf16>, vector<128x16xbf16>, vector<32x128xf32> -> vector<32x128xf32>
    %9 = vector.broadcast %1 : vector<32x1xf32> to vector<32x128xf32>
    %10 = arith.addf %8, %9 : vector<32x128xf32>
    %11 = math.tanh %10 : vector<32x128xf32>
    %c0_5 = arith.constant 0 : index
    %c0_6 = arith.constant 0 : index
    %12 = vector.load %arg3[%c0_5, %c0_6] : memref<32x32xbf16, #tpu.memory_space<vmem>>, vector<32x32xbf16>
    %13 = arith.truncf %11 : vector<32x128xf32> to vector<32x128xbf16>
    %cst_7 = arith.constant dense<0.000000e+00> : vector<32x128xf32>
    %14 = tpu.matmul %12, %13, %cst_7 {dimension_numbers = #tpu.dot_dimension_numbers<[1], [0], [0], [1], [0, 0, 1, 1], [], []>} : vector<32x32xbf16>, vector<32x128xbf16>, vector<32x128xf32> -> vector<32x128xf32>
    %15 = vector.broadcast %2 : vector<32x1xf32> to vector<32x128xf32>
    %16 = arith.addf %14, %15 : vector<32x128xf32>
    %17 = math.tanh %16 : vector<32x128xf32>
    %18 = vector.broadcast %3 : vector<32x1xf32> to vector<32x128xf32>
    %19 = arith.mulf %17, %18 : vector<32x128xf32>
    %cst_8 = arith.constant dense<0.000000e+00> : vector<128xf32>
    %20 = vector.multi_reduction <add>, %19, %cst_8 [0] : vector<32x128xf32> to vector<128xf32>
    %21 = vector.shape_cast %20 : vector<128xf32> to vector<1x128xf32>
    %22 = vector.broadcast %4 : vector<1x1xf32> to vector<1x128xf32>
    %23 = arith.addf %21, %22 : vector<1x128xf32>
    %cst_9 = arith.constant 0.000000e+00 : f32
    %24 = vector.broadcast %cst_9 : f32 to vector<1x128xf32>
    %25 = arith.subf %24, %23 : vector<1x128xf32>
    %26 = math.exp %25 : vector<1x128xf32>
    %cst_10 = arith.constant 1.000000e+00 : f32
    %27 = vector.broadcast %cst_10 : f32 to vector<1x128xf32>
    %28 = arith.addf %27, %26 : vector<1x128xf32>
    %29 = tpu.reciprocal %28 {approx = true} : vector<1x128xf32> -> vector<1x128xf32>
    %c0_11 = arith.constant 0 : index
    %c0_12 = arith.constant 0 : index
    %30 = vector.load %arg5[%c0_11, %c0_12] : memref<1x128xf32, #tpu.memory_space<vmem>>, vector<1x128xf32>
    tpu.vector_store %arg5[%c0_11, %c0_12], %29 {strides = array<i32>} : memref<1x128xf32, #tpu.memory_space<vmem>>, vector<1x128xf32>,
    return
  }
  func.func @transform_0(%arg0: i32) -> (i32, i32) {
    %c0_i32 = arith.constant 0 : i32
    %c0_i32_0 = arith.constant 0 : i32
    return %arg0, %c0_i32 : i32, i32
  }
  func.func @transform_1(%arg0: i32) -> (i32, i32) {
    %c0_i32 = arith.constant 0 : i32
    %c0_i32_0 = arith.constant 0 : i32
    %c0_i32_1 = arith.constant 0 : i32
    return %c0_i32, %c0_i32_0 : i32, i32
  }
  func.func @transform_2(%arg0: i32) -> (i32, i32) {
    %c0_i32 = arith.constant 0 : i32
    %c0_i32_0 = arith.constant 0 : i32
    %c0_i32_1 = arith.constant 0 : i32
    return %c0_i32, %c0_i32_0 : i32, i32
  }
  func.func @transform_3(%arg0: i32) -> (i32, i32) {
    %c0_i32 = arith.constant 0 : i32
    %c0_i32_0 = arith.constant 0 : i32
    %c0_i32_1 = arith.constant 0 : i32
    return %c0_i32, %c0_i32_0 : i32, i32
  }
  func.func @transform_4(%arg0: i32) -> (i32, i32) {
    %c0_i32 = arith.constant 0 : i32
    %c0_i32_0 = arith.constant 0 : i32
    return %c0_i32, %arg0 : i32, i32
  }
}

</mosaic_0001>

<bundles_post_ra>
// kernel: tpu_custom_call.1
= control target key start
LH: loop header
LB: loop body
LE: loop exit
PB: predicated region body
PF: predicated region fallthrough
CT: control target
= control target key end

     0   :  { %vm81_vm0 = vcmask 130048   ;;  %v427_v5 = vmov 0   ;;  %s552_s0 = inlined_call_operand.vmem [shape: f32[8,16], index: 0, kind: input, shape index: {}]   ;;  %s553_s1 = inlined_call_operand.vmem [shape: bf16[32,16], index: 1, kind: input, shape index: {}]   ;;  %s554_s2 = inlined_call_operand.vmem [shape: bf16[32,32], index: 2, kind: input, shape index: {}]   ;;  %s555_s3 = inlined_call_operand.vmem [shape: f32[32,4], index: 3, kind: input, shape index: {}]   ;;  %s556_s4 = inlined_call_operand.hbm [shape: f32[1,8], index: 4, kind: output, shape index: {}]  }
   0x1   :  { %v37_v0 = vld [vmem:[%s552_s0 + $0x70] sm:$0xff]  ;;  %v38_v1 = vld [vmem:[%s552_s0 + $0x78] sm:$0xff]  ;;  %v35_v2 = vld [vmem:[%s552_s0 + $0x60] sm:$0xff]  ;;  %374 = vset.pattern.permute.xlu0 %v427_v5  ;;  %375 = vset.pattern.permute.xlu1 %v427_v5 }
   0x2   :  { %v46_v3 = vpack.c.bf16 %v38_v1, %v37_v0  ;;  %v36_v4 = vld [vmem:[%s552_s0 + $0x68] sm:$0xff]  ;;  %v33_v8 = vld [vmem:[%s552_s0 + $0x50] sm:$0xff]  ;;  %v34_v9 = vld [vmem:[%s552_s0 + $0x58] sm:$0xff] }
   0x3   :  { %v45_v6 = vpack.c.bf16 %v36_v4, %v35_v2  ;;  %v381_v10 = vld [vmem:[%s553_s1] sm:$0xff]   ;;  %v21_v11 = vld [vmem:[%s555_s3 + $0x10] sm:$0xff]  ;;  %v22_v13 = vld [vmem:[%s555_s3 + $0x18] sm:$0xff]  ;;  %v44_v15 = vpack.c.bf16 %v34_v9, %v33_v8 }
   0x4   :  { %361 = vmatprep.subr.msk.bf16.mxu0 %vm81_vm0, %v46_v3  ;;  %v110_v7 = vsel %vm81_vm0, %v46_v3, 0  ;;  %349 = vmatprep.mubr.msk.bf16.mxu0 %vm81_vm0, %v381_v10  ;;  %v19_v14 = vld [vmem:[%s555_s3] sm:$0xff]  ;;  %v20_v16 = vld [vmem:[%s555_s3 + $0x8] sm:$0xff] }
   0x5   :  { %334 = vmatpush3.bf16.xpose.msra.mxu0 %v110_v7  ;;  %v107_v12 = vsel %vm81_vm0, %v45_v6, 0  ;;  %63 = vperm.xlu0 %374, %v21_v11  }
   0x6   :  { %362 = vmatprep.subr.msk.bf16.mxu0 %vm81_vm0, %v45_v6  ;;  %53 = vperm.xlu1 %375, %v19_v14  }
   0x7   :  { %9 = vsyncpa [#allocation3], 0  ;;  %v31_v17 = vld [vmem:[%s552_s0 + $0x40] sm:$0xff]  ;;  %v32_v18 = vld [vmem:[%s552_s0 + $0x48] sm:$0xff]  ;;  %v104_v19 = vsel %vm81_vm0, %v44_v15, 0  ;;  %vm197_vm1 = vcmask 261120  }
   0x8   :  { %v43_v20 = vpack.c.bf16 %v32_v18, %v31_v17  ;;  %v29_v21 = vld [vmem:[%s552_s0 + $0x30] sm:$0xff]  ;;  %v30_v22 = vld [vmem:[%s552_s0 + $0x38] sm:$0xff]  ;;  %v27_v25 = vld [vmem:[%s552_s0 + $0x20] sm:$0xff]  ;;  %v428_v40 = vmov 1   ;;  %v429_v41 = vmov 2   ;;  %v430_v42 = vmov 3  }
   0x9   :  { %68 = vperm.xlu0 %374, %v22_v13   ;;  %v42_v24 = vpack.c.bf16 %v30_v22, %v29_v21  ;;  %v28_v26 = vld [vmem:[%s552_s0 + $0x28] sm:$0xff]  ;;  %v25_v29 = vld [vmem:[%s552_s0 + $0x10] sm:$0xff]  ;;  %v26_v30 = vld [vmem:[%s552_s0 + $0x18] sm:$0xff] }
   0xa   :  { %58 = vperm.xlu1 %375, %v20_v16   ;;  %v101_v23 = vsel %vm81_vm0, %v43_v20, 0  ;;  %v41_v28 = vpack.c.bf16 %v28_v26, %v27_v25  ;;  %v40_v32 = vpack.c.bf16 %v26_v30, %v25_v29  ;;  %v23_v33 = vld [vmem:[%s552_s0] sm:$0xff]  ;;  %v24_v34 = vld [vmem:[%s552_s0 + $0x8] sm:$0xff] }
   0xb   :  { %v98_v27 = vsel %vm81_vm0, %v42_v24, 0  ;;  %v39_v36 = vpack.c.bf16 %v24_v34, %v23_v33  ;;  %v382_v38 = vld [vmem:[%s553_s1 + $0x8] sm:$0xff]   ;;  %v383_v39 = vld [vmem:[%s554_s2] sm:$0xff]  }
   0xc   :  { %v95_v31 = vsel %vm81_vm0, %v41_v28, 0  ;;  %v92_v35 = vsel %vm81_vm0, %v40_v32, 0  ;;  %357 = vmatprep.mubr.msk.bf16.mxu1 %vm197_vm1, %v383_v39  ;;  %v384_v61 = vld [vmem:[%s554_s2 + $0x8] sm:$0xff]   ;;  %s431_s2 = smov [#allocation2]  }
   0xd   :  { %336 = vmatpush3.bf16.xpose.msra.mxu0 %v107_v12  ;;  %v89_v37 = vsel %vm81_vm0, %v39_v36, 0  ;;  %376 = vset.pattern.permute.xlu0 %v428_v40  ;;  %s303_s8 = sshll.u32 %s431_s2, 4  ;;  %s304_s8 = int_to_ptr.vmem [resolvable:$true] %s303_s8 }
   0xe   :  { %363 = vmatprep.subr.msk.bf16.mxu0 %vm81_vm0, %v44_v15  ;;  %377 = vset.pattern.permute.xlu1 %v428_v40  ;;  %s405_s9 = scalar_lea.vmem %s304_s8, 16  ;;  %s409_s10 = scalar_lea.vmem %s304_s8, 32 }
   0xf   :  { %176 = vperm.xlu1 %377, %v20_v16   ;;  %172 = vperm.xlu0 %376, %v19_v14   ;;  %p406_p0 = scmp.ne.s32.totalorder %s304_s8, %s405_s9  ;;  %p410_p1 = scmp.lt.s32.totalorder %s304_s8, %s304_s8 }
  0x10   :  { %p411_p2 = scmp.lt.s32.totalorder %s409_s10, %s405_s9 }
  0x12   :  { %p412_p3 = por %p411_p2, %p410_p1 }
  0x13   :  { %180 = vperm.xlu1 %377, %v21_v11   ;;  %184 = vperm.xlu0 %376, %v22_v13  }
  0x14   :  { %p413_p4 = pnand %p412_p3, %p406_p0 }
  0x15   :  { %338 = vmatpush3.bf16.xpose.msra.mxu0 %v104_v19 }
  0x16   :  { %364 = vmatprep.subr.msk.bf16.mxu0 %vm81_vm0, %v43_v20 }
  0x17   :  { %378 = vset.pattern.permute.xlu1 %v429_v41  ;;  %379 = vset.pattern.permute.xlu0 %v429_v41 }
  0x18   :  { %258 = vperm.xlu1 %378, %v19_v14   ;;  %262 = vperm.xlu0 %379, %v20_v16  }
  0x1c   :  { %266 = vperm.xlu1 %378, %v21_v11   ;;  %380 = vset.pattern.permute.xlu0 %v430_v42 }
  0x1d   :  { %340 = vmatpush3.bf16.xpose.msra.mxu0 %v101_v23  ;;  %287 = vperm.xlu0 %380, %v19_v14  }
  0x1e   :  { %365 = vmatprep.subr.msk.bf16.mxu0 %vm81_vm0, %v42_v24 }
  0x20   :  { %270 = vperm.xlu1 %378, %v22_v13  }
  0x25   :  { %342 = vmatpush3.bf16.xpose.msra.mxu0 %v98_v27 }
  0x26   :  { %366 = vmatprep.subr.msk.bf16.mxu0 %vm81_vm0, %v41_v28 }
  0x2d   :  { %344 = vmatpush3.bf16.xpose.msra.mxu0 %v95_v31 }
  0x2e   :  { %367 = vmatprep.subr.msk.bf16.mxu0 %vm81_vm0, %v40_v32 }
  0x35   :  { %346 = vmatpush3.bf16.xpose.msra.mxu0 %v92_v35 }
  0x36   :  { %368 = vmatprep.subr.msk.bf16.mxu0 %vm81_vm0, %v39_v36 }
  0x3d   :  { %348 = vmatpush3.bf16.xpose.msra.mxu0 %v89_v37 }
  0x44   :  { %350 = vmatmul.mubr.msk.bf16.vlgmr.msra.gmra.mxu0 %vm81_vm0, %v382_v38 }
  0x80   :  { %v64_v43 = vpop.permute.xlu0 %63 }
  0x81   :  { %v54_v45 = vpop.permute.xlu1 %53 }
  0x84   :  { %v69_v48 = vpop.permute.xlu0 %68 }
  0x85   :  { %v59_v52 = vpop.permute.xlu1 %58 }
  0x8a   :  { %v177_v62 = vpop.permute.xlu1 %176  ;;  %v173_v63 = vpop.permute.xlu0 %172 }
  0x8e   :  { %v181_v1 = vpop.permute.xlu1 %180  ;;  %v185_v5 = vpop.permute.xlu0 %184 }
  0x93   :  { %v259_v10 = vpop.permute.xlu1 %258  ;;  %v263_v13 = vpop.permute.xlu0 %262 }
  0x97   :  { %v267_v12 = vpop.permute.xlu1 %266 }
  0x98   :  { %v288_v30 = vpop.permute.xlu0 %287 }
  0x9b   :  { %v271_v21 = vpop.permute.xlu1 %270 }
 0x104   :  { %v351_v44 = vpop.f32.mrf.mxu0 }
 0x105   :  { %v155_v46 = vadd.f32 %v351_v44, %v64_v43 }
 0x106   :  { %v146_v47 = vpop.f32.mrf.mxu0 }
 0x107   :  { %v147_v49 = vadd.f32 %v146_v47, %v54_v45  ;;  %385 = vtanh.f32 %v155_v46 }
 0x108   :  { %v352_v50 = vpop.f32.mrf.mxu0 }
 0x109   :  { %v158_v51 = vadd.f32 %v352_v50, %v69_v48 }
 0x10a   :  { %v149_v53 = vpop.f32.mrf.mxu0 }
 0x10b   :  { %387 = vtanh.f32 %v158_v51  ;;  %v150_v54 = vadd.f32 %v149_v53, %v59_v52 }
 0x10c   :  { %389 = vtanh.f32 %v147_v49 }
 0x10d   :  { %391 = vtanh.f32 %v150_v54 }
 0x114   :  { %v386_v55 = vpop.eup %385 }
 0x118   :  { %v388_v56 = vpop.eup %387 }
 0x119   :  { %v390_v57 = vpop.eup %389  ;;  %v170_v58 = vpack.c.bf16 %v388_v56, %v386_v55 }
 0x11a   :  { %v392_v59 = vpop.eup %391 }
 0x11b   :  { %353 = vmatprep.subr.bf16.mxu1 %v170_v58  ;;  %v169_v60 = vpack.c.bf16 %v392_v59, %v390_v57 }
 0x11c   :  { %354 = vmatpush3.bf16.msra.mxu1 %v170_v58 }
 0x11d   :  { %355 = vmatprep.subr.bf16.mxu1 %v169_v60 }
 0x120   :  { %356 = vmatpush3.bf16.msra.mxu1 %v169_v60 }
 0x123   :  { %358 = vmatmul.mubr.msk.bf16.vlgmr.msra.gmra.mxu1 %vm197_vm1, %v384_v61 }
 0x1e3   :  { %v359_v0 = vpop.f32.mrf.mxu1 }
 0x1e4   :  { %v247_v4 = vadd.f32 %v359_v0, %v181_v1 }
 0x1e5   :  { %v238_v2 = vpop.f32.mrf.mxu1 }
 0x1e6   :  { %v239_v3 = vadd.f32 %v238_v2, %v173_v63 }
 0x1e7   :  { %v360_v6 = vpop.f32.mrf.mxu1 }
 0x1e8   :  { %393 = vtanh.f32 %v239_v3  ;;  %v250_v8 = vadd.f32 %v360_v6, %v185_v5 }
 0x1e9   :  { %v241_v7 = vpop.f32.mrf.mxu1  ;;  %395 = vtanh.f32 %v247_v4 }
 0x1ea   :  { %v242_v9 = vadd.f32 %v241_v7, %v177_v62 }
 0x1ec   :  { %397 = vtanh.f32 %v242_v9 }
 0x1ed   :  { %399 = vtanh.f32 %v250_v8 }
 0x1f5   :  { %v394_v11 = vpop.eup %393 }
 0x1f6   :  { %v396_v14 = vpop.eup %395  ;;  %v273_v16 = vmul.f32 %v394_v11, %v259_v10 }
 0x1f7   :  { %v275_v19 = vmul.f32 %v396_v14, %v267_v12 }
 0x1f9   :  { %v398_v15 = vpop.eup %397 }
 0x1fa   :  { %v274_v17 = vmul.f32 %v398_v15, %v263_v13  ;;  %v400_v18 = vpop.eup %399 }
 0x1fb   :  { %v276_v22 = vmul.f32 %v400_v18, %v271_v21 }
 0x1fc   :  { %v277_v20 = vadd.f32 %v274_v17, %v273_v16 }
 0x1fe   :  { %v278_v23 = vadd.f32 %v277_v20, %v275_v19 }
 0x200   :  { %v279_v24 = vadd.f32 %v278_v23, %v276_v22 }
 0x202   :  { %v280_v25 = vrot.slane %v279_v24, 4 }
 0x204   :  { %v281_v26 = vadd.f32 %v280_v25, %v279_v24 }
 0x206   :  { %v282_v27 = vrot.slane %v281_v26, 2 }
 0x208   :  { %v283_v28 = vadd.f32 %v282_v27, %v281_v26 }
 0x20a   :  { %v284_v29 = vrot.slane %v283_v28, 1 }
 0x20c   :  { %v285_v31 = vadd.f32 %v284_v29, %v283_v28 }
 0x20e   :  { %v290_v32 = vadd.f32 %v288_v30, %v285_v31 }
 0x210   :  { %v291_v33 = vsub.f32 0.0, %v290_v32 }
 0x212   :  { %v292_v34 = vmul.f32 1.442695, %v291_v33 }
 0x214   :  { %401 = vpow2.f32 %v292_v34 }
 0x221   :  { %v402_v35 = vpop.eup %401 }
 0x222   :  { %v294_v36 = vadd.f32 1.0, %v402_v35 }
 0x224   :  { %403 = vrcp.f32 %v294_v36 }
 0x231   :  { %v404_v37 = vpop.eup %403 }
 0x232   :  { %296 = vst [vmem:[#allocation2] sm:$0x1] %v404_v37 }
 0x233   :  { %416 = shalt.err (!%p413_p4)
}
 0x234   :  { %306 = dma.vmem_to_hbm [thread:$0]  %s304_s8, 16, %s556_s4, [#allocation3]  }
 0x235   :  { %425 = dma.done.wait [#allocation3], 16  }
 0x236   :  { %426 = vsyncadd [#allocation3], 4294967280 }
 0x237   :  { %310 = vsyncpa [#allocation3], 1 }

</bundles_post_ra>
